<compile_context>
chip_gen: v5e
topology: v5e:2x2
jax: 0.10.0
libtpu: 0.0.40
codegen_flags: <defaults>
</compile_context>

<pallas_src>
import functools

import jax
import jax.numpy as jnp
from jax.experimental import pallas as pl
from jax.experimental.pallas import tpu as pltpu

_PAIRWISE_EPS = 1e-6  # matches torch.nn.functional.pairwise_distance default eps


def _triplet_kernel(a_ref, p_ref, n_ref, loss_ref, *,
                    margin, valid_rows, block_rows, pack, dim):
    """One (TB, pack*dim) tile: per-sample L2 distances + margin ranking loss.

    With pack == 1 the tile holds TB samples of dim D (standard layout).
    With pack > 1 each 128-lane row holds `pack` consecutive samples of dim D
    side by side, so the per-sample reduction is done per lane-chunk.
    """
    a = a_ref[...].astype(jnp.float32)
    p = p_ref[...].astype(jnp.float32)
    n = n_ref[...].astype(jnp.float32)

    # F.pairwise_distance(x1, x2) == || x1 - x2 + eps ||_2 along dim=-1
    dp = a - p + _PAIRWISE_EPS
    dn = a - n + _PAIRWISE_EPS
    sq_p = dp * dp
    sq_n = dn * dn

    if pack == 1:
        d2p = jnp.sum(sq_p, axis=-1, keepdims=True)               # (TB, 1)
        d2n = jnp.sum(sq_n, axis=-1, keepdims=True)
    else:
        # Exact f32 per-chunk lane reductions (MXU-free, XLU/VPU have slack).
        pparts, nparts = [], []
        for q in range(pack):
            sl = slice(q * dim, (q + 1) * dim)
            pparts.append(jnp.sum(sq_p[:, sl], axis=-1, keepdims=True))
            nparts.append(jnp.sum(sq_n[:, sl], axis=-1, keepdims=True))
        d2p = jnp.concatenate(pparts, axis=-1)                     # (TB, pack)
        d2n = jnp.concatenate(nparts, axis=-1)

    loss = jnp.maximum(jnp.sqrt(d2p) - jnp.sqrt(d2n) + margin, 0.0)

    # Mask rows past the true (packed) batch size: ragged last tile / sublane
    # padding never contributes ~margin (or OOB garbage/NaN) to sum/mean.
    row = (pl.program_id(0) * block_rows
           + jax.lax.broadcasted_iota(jnp.int32, (block_rows, pack), 0))
    loss = jnp.where(row < valid_rows, loss, 0.0)

    loss_ref[...] = loss


def _round_up(x, m):
    return ((x + m - 1) // m) * m


def _vmem_plan():
    """Per-generation (budget_for_tiles, compiler_vmem_limit) in bytes.

    v5e/v6e: 128 MiB physical VMEM -> ~40 MiB tile budget, 64 MiB scoped limit.
    v7x:      64 MiB physical VMEM -> ~28 MiB tile budget, ~45 MiB scoped limit.
    """
    cap = 64 << 20  # conservative fallback = v7x physical VMEM
    try:
        info = pltpu.get_tpu_info()
        cap = int(getattr(info, "vmem_capacity_bytes", cap))
    except Exception:
        pass
    budget = min(int(cap * 0.45), 40 << 20)
    limit = min(int(cap * 0.70), 64 << 20)
    limit = max(limit, budget + (8 << 20))
    return budget, limit


def _choose_block_rows(rows, width, itemsize, budget):
    """Pick the batch-tile row count.

    Per-row footprint counts the 3 double-buffered input tiles *and* the f32
    intermediates the kernel materializes (upcasts + diff/square temps).
    """
    per_row = 3 * 2 * width * itemsize + 5 * width * 4
    max_rows = max(8, (budget // per_row) // 8 * 8)
    if rows <= 256:
        # Small problem: a single (budget-clamped) tile; splitting only adds
        # per-step overhead.
        return min(_round_up(rows, 8), max_rows)
    # Emit >= 2 tiles so the "parallel" grid axis can shard across both v7x
    # TensorCores; otherwise take the largest tile the budget allows (>=512
    # rows is the HBM-roofline knee), capped at 4096 rows.
    return max(8, min(max_rows, _round_up(pl.cdiv(rows, 2), 8), 4096))


def triplet_loss(anchor, positive, negative, *, margin=1.0, reduction="mean",
                 block_rows=None):
    """Pallas implementation of TripletLoss.forward.

    anchor / positive / negative: [B, D] float arrays.  Pass bf16 directly if
    you have it (do NOT upcast at the call site): the kernel is HBM-bound and
    upcasts to f32 internally.
    Returns a scalar (mean / sum) or a [B] float32 vector (none).
    """
    assert anchor.shape == positive.shape == negative.shape
    assert anchor.ndim == 2
    B, D = anchor.shape
    itemsize = jnp.dtype(anchor.dtype).itemsize

    # Small-D lane packing: P = 128 // D samples per 128-lane row.
    pack = 1
    if D < 128 and 128 % D == 0:
        cand = 128 // D
        if B % cand == 0 and B // cand >= 8:
            pack = cand
    rows = B // pack
    width = pack * D
    if pack > 1:
        # Row-major [B, D] -> [B//P, P*D] is a free (bitcast) reshape.
        anchor = anchor.reshape(rows, width)
        positive = positive.reshape(rows, width)
        negative = negative.reshape(rows, width)

    budget, vmem_limit = _vmem_plan()
    if block_rows is not None:
        tb = int(block_rows)
    else:
        tb = _choose_block_rows(rows, width, itemsize, budget)
    num_tiles = pl.cdiv(rows, tb)
    rows_pad = num_tiles * tb

    # Deeper input pipelining only when tiles are small and grid steps many
    # (per-step overhead / DMA ramp otherwise exposed at 2-deep buffering).
    buffers = 3 if (tb <= 256 and num_tiles >= 8) else 2

    kernel = functools.partial(
        _triplet_kernel, margin=float(margin), valid_rows=rows,
        block_rows=tb, pack=pack, dim=D)

    if buffers > 2:
        in_spec = pl.BlockSpec((tb, width), lambda i: (i, 0),
                               pipeline_mode=pl.Buffered(buffers))
    else:
        in_spec = pl.BlockSpec((tb, width), lambda i: (i, 0))
    out_spec = pl.BlockSpec((tb, pack), lambda i: (i, 0))

    cost = pl.CostEstimate(
        flops=8 * B * D,                   # 2 x (sub + eps-add + square + acc)
        transcendentals=2 * B,             # 2 sqrts per sample
        bytes_accessed=3 * B * D * itemsize + rows_pad * pack * 4,
    )

    out = pl.pallas_call(
        kernel,
        out_shape=jax.ShapeDtypeStruct((rows_pad, pack), jnp.float32),
        grid=(num_tiles,),
        in_specs=[in_spec, in_spec, in_spec],
        out_specs=out_spec,
        compiler_params=pltpu.CompilerParams(
            dimension_semantics=("parallel",),
            vmem_limit_bytes=int(vmem_limit)),
        cost_estimate=cost,
    )(anchor, positive, negative)

    if reduction == "sum":
        return jnp.sum(out)                      # padded rows masked to 0
    if reduction == "mean":
        return jnp.sum(out) / jnp.float32(B)
    return out.reshape(-1)[:B]                   # 'none': per-sample [B]


def _ref(a, p, n, margin=1.0):
    a = a.astype(jnp.float32)
    p = p.astype(jnp.float32)
    n = n.astype(jnp.float32)
    dpos = jnp.sqrt(jnp.sum((a - p + _PAIRWISE_EPS) ** 2, axis=-1))
    dneg = jnp.sqrt(jnp.sum((a - n + _PAIRWISE_EPS) ** 2, axis=-1))
    return jnp.maximum(dpos - dneg + margin, 0.0)


def _rand_triplet(key, B, D, dtype=jnp.float32):
    ka, kp, kn = jax.random.split(key, 3)
    return (jax.random.normal(ka, (B, D), dtype=dtype),
            jax.random.normal(kp, (B, D), dtype=dtype),
            jax.random.normal(kn, (B, D), dtype=dtype))


if __name__ == "__main__":
    key = jax.random.PRNGKey(0)

    # 1) Module-consistent small shapes [batch, embedding_dim]: B=8, D=32.
    #    (Too small to pack: falls back to the plain (TB, D) path.)
    a, p, n = _rand_triplet(key, 8, 32)
    loss_mean = triplet_loss(a, p, n, margin=1.0, reduction="mean")
    loss_sum = triplet_loss(a, p, n, margin=1.0, reduction="sum")
    loss_none = triplet_loss(a, p, n, margin=1.0, reduction="none")
    jax.block_until_ready((loss_mean, loss_sum, loss_none))
    r = _ref(a, p, n)
    assert jnp.allclose(loss_none, r, atol=1e-5)
    assert jnp.allclose(loss_mean, r.mean(), atol=1e-5)
    assert jnp.allclose(loss_sum, r.sum(), atol=1e-4)

    # 2) Unpacked multi-tile + ragged last tile (B % pack != 0 so no packing).
    a2, p2, n2 = _rand_triplet(jax.random.PRNGKey(1), 203, 32)
    r2 = _ref(a2, p2, n2)
    o2n = triplet_loss(a2, p2, n2, reduction="none", block_rows=128)
    o2m = triplet_loss(a2, p2, n2, reduction="mean", block_rows=128)
    o2s = triplet_loss(a2, p2, n2, reduction="sum", block_rows=128)
    jax.block_until_ready((o2n, o2m, o2s))
    assert jnp.allclose(o2n, r2, atol=1e-5)
    assert jnp.allclose(o2m, r2.mean(), atol=1e-4)
    assert jnp.allclose(o2s, r2.sum(), atol=1e-3)

    # 3) Small-D lane-packed path (D=32 -> 4 samples per 128-lane row).
    a3, p3, n3 = _rand_triplet(jax.random.PRNGKey(2), 512, 32)
    r3 = _ref(a3, p3, n3)
    o3n = triplet_loss(a3, p3, n3, reduction="none")
    o3m = triplet_loss(a3, p3, n3, reduction="mean")
    jax.block_until_ready((o3n, o3m))
    assert jnp.allclose(o3n, r3, atol=1e-5)
    assert jnp.allclose(o3m, r3.mean(), atol=1e-4)

    # 4) Packed + multi-tile + ragged last packed tile.
    a4, p4, n4 = _rand_triplet(jax.random.PRNGKey(3), 640, 32)
    r4 = _ref(a4, p4, n4)
    o4n = triplet_loss(a4, p4, n4, reduction="none", block_rows=64)
    o4s = triplet_loss(a4, p4, n4, reduction="sum", block_rows=64)
    jax.block_until_ready((o4n, o4s))
    assert jnp.allclose(o4n, r4, atol=1e-5)
    assert jnp.allclose(o4s, r4.sum(), atol=1e-2)

    # 5) Small-tile / many-step configuration -> exercises pl.Buffered(3).
    a5, p5, n5 = _rand_triplet(jax.random.PRNGKey(4), 1280, 256)
    r5 = _ref(a5, p5, n5)
    o5m = triplet_loss(a5, p5, n5, reduction="mean", block_rows=128)
    jax.block_until_ready(o5m)
    assert jnp.allclose(o5m, r5.mean(), atol=1e-4)

    # 6) bf16 inputs (half the HBM bytes); kernel upcasts to f32 internally.
    a6, p6, n6 = (x.astype(jnp.bfloat16) for x in _rand_triplet(key, 512, 32))
    o6m = triplet_loss(a6, p6, n6, reduction="mean")
    jax.block_until_ready(o6m)
    r6 = _ref(a6, p6, n6).mean()
    assert jnp.allclose(o6m, r6, atol=1e-5)

    print("KERNEL_OK")
</pallas_src>

<mosaic_0001>
module attributes {stable_mosaic.version = 11 : i64} {
  func.func @_triplet_kernel(%arg0: i32, %arg1: memref<8x32xf32, #tpu.memory_space<vmem>>, %arg2: memref<8x32xf32, #tpu.memory_space<vmem>>, %arg3: memref<8x32xf32, #tpu.memory_space<vmem>>, %arg4: memref<8x1xf32, #tpu.memory_space<vmem>>) attributes {dimension_semantics = [#tpu.dimension_semantics<parallel>], iteration_bounds = array<i64: 1>, scalar_prefetch = 0 : i64, scratch_operands = 0 : i64, tpu.core_type = #tpu.core_type<tc>, window_params = [{transform_indices = @transform_0, window_bounds = array<i64: 8, 32>}, {transform_indices = @transform_1, window_bounds = array<i64: 8, 32>}, {transform_indices = @transform_2, window_bounds = array<i64: 8, 32>}, {transform_indices = @transform_3, window_bounds = array<i64: 8, 1>}]} {
    %c0 = arith.constant 0 : index
    %c0_0 = arith.constant 0 : index
    %0 = vector.load %arg1[%c0, %c0_0] : memref<8x32xf32, #tpu.memory_space<vmem>>, vector<8x32xf32>
    %c0_1 = arith.constant 0 : index
    %c0_2 = arith.constant 0 : index
    %1 = vector.load %arg2[%c0_1, %c0_2] : memref<8x32xf32, #tpu.memory_space<vmem>>, vector<8x32xf32>
    %c0_3 = arith.constant 0 : index
    %c0_4 = arith.constant 0 : index
    %2 = vector.load %arg3[%c0_3, %c0_4] : memref<8x32xf32, #tpu.memory_space<vmem>>, vector<8x32xf32>
    %3 = arith.subf %0, %1 : vector<8x32xf32>
    %cst = arith.constant 9.99999997E-7 : f32
    %4 = vector.broadcast %cst : f32 to vector<8x32xf32>
    %5 = arith.addf %3, %4 : vector<8x32xf32>
    %6 = arith.subf %0, %2 : vector<8x32xf32>
    %cst_5 = arith.constant 9.99999997E-7 : f32
    %7 = vector.broadcast %cst_5 : f32 to vector<8x32xf32>
    %8 = arith.addf %6, %7 : vector<8x32xf32>
    %9 = arith.mulf %5, %5 : vector<8x32xf32>
    %10 = arith.mulf %8, %8 : vector<8x32xf32>
    %cst_6 = arith.constant dense<0.000000e+00> : vector<8xf32>
    %11 = vector.multi_reduction <add>, %9, %cst_6 [1] : vector<8x32xf32> to vector<8xf32>
    %12 = vector.shape_cast %11 : vector<8xf32> to vector<8x1xf32>
    %cst_7 = arith.constant dense<0.000000e+00> : vector<8xf32>
    %13 = vector.multi_reduction <add>, %10, %cst_7 [1] : vector<8x32xf32> to vector<8xf32>
    %14 = vector.shape_cast %13 : vector<8xf32> to vector<8x1xf32>
    %15 = math.sqrt %12 : vector<8x1xf32>
    %16 = math.sqrt %14 : vector<8x1xf32>
    %17 = arith.subf %15, %16 : vector<8x1xf32>
    %cst_8 = arith.constant 1.000000e+00 : f32
    %18 = vector.broadcast %cst_8 : f32 to vector<8x1xf32>
    %19 = arith.addf %17, %18 : vector<8x1xf32>
    %cst_9 = arith.constant 0.000000e+00 : f32
    %20 = vector.broadcast %cst_9 : f32 to vector<8x1xf32>
    %21 = arith.maximumf %19, %20 : vector<8x1xf32>
    %c8_i32 = arith.constant 8 : i32
    %22 = arith.muli %arg0, %c8_i32 : i32
    %23 = tpu.iota {dimensions = array<i32: 0>} : vector<8x1xi32>
    %24 = vector.broadcast %22 : i32 to vector<8x1xi32>
    %25 = arith.addi %24, %23 : vector<8x1xi32>
    %c8_i32_10 = arith.constant 8 : i32
    %26 = vector.broadcast %c8_i32_10 : i32 to vector<8x1xi32>
    %27 = arith.cmpi slt, %25, %26 : vector<8x1xi32>
    %cst_11 = arith.constant 0.000000e+00 : f32
    %28 = vector.broadcast %cst_11 : f32 to vector<8x1xf32>
    %29 = arith.select %27, %21, %28 : vector<8x1xi1>, vector<8x1xf32>
    %c0_12 = arith.constant 0 : index
    %c0_13 = arith.constant 0 : index
    %30 = vector.load %arg4[%c0_12, %c0_13] : memref<8x1xf32, #tpu.memory_space<vmem>>, vector<8x1xf32>
    tpu.vector_store %arg4[%c0_12, %c0_13], %29 {strides = array<i32>} : memref<8x1xf32, #tpu.memory_space<vmem>>, vector<8x1xf32>,
    return
  }
  func.func @transform_0(%arg0: i32) -> (i32, i32) {
    %c0_i32 = arith.constant 0 : i32
    %c0_i32_0 = arith.constant 0 : i32
    return %arg0, %c0_i32 : i32, i32
  }
  func.func @transform_1(%arg0: i32) -> (i32, i32) {
    %c0_i32 = arith.constant 0 : i32
    %c0_i32_0 = arith.constant 0 : i32
    return %arg0, %c0_i32 : i32, i32
  }
  func.func @transform_2(%arg0: i32) -> (i32, i32) {
    %c0_i32 = arith.constant 0 : i32
    %c0_i32_0 = arith.constant 0 : i32
    return %arg0, %c0_i32 : i32, i32
  }
  func.func @transform_3(%arg0: i32) -> (i32, i32) {
    %c0_i32 = arith.constant 0 : i32
    %c0_i32_0 = arith.constant 0 : i32
    return %arg0, %c0_i32 : i32, i32
  }
}

</mosaic_0001>

<bundles_post_ra>
// kernel: tpu_custom_call.1
= control target key start
LH: loop header
LB: loop body
LE: loop exit
PB: predicated region body
PF: predicated region fallthrough
CT: control target
= control target key end

     0   :  { %8 = vsyncpa [#allocation3], 0  ;;  %s231_s0 = inlined_call_operand.hbm [shape: f32[8,32], index: 0, kind: input, shape index: {}]   ;;  %s232_s1 = inlined_call_operand.hbm [shape: f32[8,32], index: 1, kind: input, shape index: {}]   ;;  %s233_s2 = inlined_call_operand.hbm [shape: f32[8,32], index: 2, kind: input, shape index: {}]   ;;  %s234_s3 = inlined_call_operand.vmem [shape: f32[8,1], index: 3, kind: output, shape index: {}]  }
   0x1   :  { %9 = vsyncpa [#allocation5], 0  ;;  %s26_s14 = sshll.u32 %s232_s1, 4  ;;  %s196_s15 = smov [#allocation4]   ;;  %s27_s14 = int_to_ptr.hbm [resolvable:$true] %s26_s14 }
   0x2   :  { %s28_s16 = sshll.u32 %s196_s15, 4  ;;  %s15_s19 = sshll.u32 %s231_s0, 4  ;;  %s29_s16 = int_to_ptr.vmem [resolvable:$true] %s28_s16  ;;  %s16_s19 = int_to_ptr.hbm [resolvable:$true] %s15_s19 }
   0x3   :  { %31 = dma.hbm_to_vmem [thread:$0]  %s27_s14, 128, %s29_s16, [#allocation5]  }
   0x4   :  { %s197_s20 = smov [#allocation2]   ;;  %s37_s24 = sshll.u32 %s233_s2, 4  ;;  %s38_s24 = int_to_ptr.hbm [resolvable:$true] %s37_s24 }
   0x5   :  { %s17_s21 = sshll.u32 %s197_s20, 4  ;;  %s198_s1 = smov [#allocation6]   ;;  %s18_s21 = int_to_ptr.vmem [resolvable:$true] %s17_s21 }
   0x6   :  { %20 = dma.hbm_to_vmem [thread:$0]  %s16_s19, 128, %s18_s21, [#allocation3]  }
   0x7   :  { %s39_s25 = sshll.u32 %s198_s1, 4  ;;  %s40_s25 = int_to_ptr.vmem [resolvable:$true] %s39_s25 }
   0x8   :  { %42 = dma.hbm_to_vmem [thread:$0]  %s38_s24, 128, %s40_s25, [#allocation5]  }
   0x9   :  { %192 = dma.done.wait [#allocation3], 128  }
   0xa   :  { %193 = vsyncadd [#allocation3], 4294967168 }
   0xb   :  { %194 = dma.done.wait [#allocation5], 256  }
   0xc   :  { %195 = vsyncadd [#allocation5], 4294967040  ;;  %v55_v0 = vld [vmem:[#allocation2] sm:$0xff]  ;;  %v56_v1 = vld [vmem:[#allocation4] sm:$0xff]  ;;  %vm64_vm0 = vcmask 261120   ;;  %vm105_vm5 = vcmask 7168  }
   0xd   :  { %v57_v2 = vld [vmem:[#allocation6] sm:$0xff]  ;;  %v58_v3 = vsub.f32 %v55_v0, %v56_v1 }
   0xe   :  { %v60_v4 = vsub.f32 %v55_v0, %v57_v2 }
   0xf   :  { %v59_v5 = vadd.f32 1e-06, %v58_v3 }
  0x10   :  { %v61_v7 = vadd.f32 1e-06, %v60_v4 }
  0x11   :  { %v62_v6 = vmul.f32 %v59_v5, %v59_v5 }
  0x12   :  { %v63_v9 = vmul.f32 %v61_v7, %v61_v7 }
  0x13   :  { %v65_v8 = vsel %vm64_vm0, %v62_v6, 0.0 }
  0x14   :  { %66 = vadd.xlane.f32.xlu0 %v65_v8  ;;  %v68_v10 = vsel %vm64_vm0, %v63_v9, 0.0 }
  0x1c   :  { %69 = vadd.xlane.f32.xlu0 %v68_v10 }
  0x87   :  { %v67_v11 = vpop.xlane.xlu0 %66 }
  0x88   :  { %116 = vrsqrt.f32 %v67_v11  ;;  %vm78_vm1 = vcmp.eq.f32.partialorder %v67_v11, inf  ;;  %v81_v28 = vand.u32 2147483648, %v67_v11  ;;  %vm80_vm3 = vcmp.eq.f32.partialorder %v67_v11, 0.0 }
  0x8e   :  { %v117_v12 = vpop.eup %116 }
  0x8f   :  { %v72_v13 = vmul.f32 %v117_v12, %v67_v11  ;;  %v70_v14 = vpop.xlane.xlu0 %69 }
  0x90   :  { %118 = vrsqrt.f32 %v70_v14  ;;  %vm90_vm2 = vcmp.eq.f32.partialorder %v70_v14, inf  ;;  %v93_v29 = vand.u32 2147483648, %v70_v14  ;;  %vm92_vm4 = vcmp.eq.f32.partialorder %v70_v14, 0.0 }
  0x91   :  { %v73_v15 = vmul.f32 %v117_v12, %v72_v13 }
  0x93   :  { %v74_v16 = vmul.f32 0.5, %v73_v15 }
  0x95   :  { %v75_v17 = vsub.f32 1.5, %v74_v16 }
  0x96   :  { %v119_v18 = vpop.eup %118 }
  0x97   :  { %v84_v19 = vmul.f32 %v119_v18, %v70_v14  ;;  %v76_v20 = vmul.f32 %v117_v12, %v75_v17 }
  0x99   :  { %v85_v21 = vmul.f32 %v119_v18, %v84_v19  ;;  %v77_v23 = vmul.f32 %v76_v20, %v67_v11 }
  0x9b   :  { %v86_v22 = vmul.f32 0.5, %v85_v21  ;;  %v79_v26 = vsel %vm78_vm1, %v67_v11, %v77_v23 }
  0x9c   :  { %v82_v31 = vsel %vm80_vm3, %v81_v28, %v79_v26 }
  0x9d   :  { %v87_v24 = vsub.f32 1.5, %v86_v22 }
  0x9f   :  { %v88_v25 = vmul.f32 %v119_v18, %v87_v24 }
  0xa1   :  { %v89_v27 = vmul.f32 %v88_v25, %v70_v14 }
  0xa3   :  { %v91_v30 = vsel %vm90_vm2, %v70_v14, %v89_v27 }
  0xa4   :  { %v94_v32 = vsel %vm92_vm4, %v93_v29, %v91_v30 }
  0xa5   :  { %v95_v33 = vsub.f32 %v82_v31, %v94_v32 }
  0xa7   :  { %v96_v34 = vadd.f32 1.0, %v95_v33 }
  0xa9   :  { %v97_v35 = vmax.f32 %v96_v34, 0.0 }
  0xab   :  { %106 = vst.msk [vmem:[%s234_s3] sm:$0xff] %vm105_vm5, %v97_v35 }
  0xac   :  { %111 = vsyncpa [#allocation3], 1 }
  0xad   :  { %112 = vsyncpa [#allocation5], 1 }

</bundles_post_ra>
